<compile_context>
chip_gen: v5e
topology: v5e:2x2
jax: 0.10.0
libtpu: 0.0.40
codegen_flags: <defaults>
</compile_context>

<pallas_src>
import numpy as np
import jax
import jax.numpy as jnp
from jax.experimental import pallas as pl
from jax.experimental.pallas import tpu as pltpu


# ----------------------------------------------------------------------------
# Fused IPAM kernel: weighted pool reduce + CAM gate + rescale, per batch block.
# ----------------------------------------------------------------------------
def _ipam_kernel(x_ref, wmap_ref, w1d_ref, o_ref):
    """x_ref / o_ref: (Bt, C, HW) VMEM; wmap_ref: (C, HW) f32 VMEM (resident);
    w1d_ref: (3,) f32 SMEM (CAM conv taps)."""
    xf = x_ref[...].astype(jnp.float32)            # (Bt, C, HW), pixels on lanes
    wmap = wmap_ref[...]                           # (C, HW), batch-invariant

    # Pooling stage: adaptive_avg_pool2d((2,2)) + depthwise conv2x2 + global
    # avg pool are all folded into wmap (precomputed in the wrapper), so
    # o_sum = o1 + o2 is one weighted lane reduction per (batch, channel) row.
    o_sum = jnp.sum(xf * wmap[None, :, :], axis=-1, keepdims=True)   # (Bt, C, 1)

    # CAM: 3-tap conv over the channel (sublane) axis, zero padded per batch.
    k0 = w1d_ref[0]
    k1 = w1d_ref[1]
    k2 = w1d_ref[2]
    bt = o_sum.shape[0]
    z = jnp.zeros((bt, 1, 1), jnp.float32)
    prev = jnp.concatenate([z, o_sum[:, :-1, :]], axis=1)     # o_sum[c-1]
    nxt = jnp.concatenate([o_sum[:, 1:, :], z], axis=1)       # o_sum[c+1]
    cam = k0 * prev + k1 * o_sum + k2 * nxt                   # (Bt, C, 1)
    gate = o_sum * jax.nn.sigmoid(cam)             # CAM(s) = s * sigmoid(conv(s))

    # Rescale the input; lane-dense store (HW is a multiple of 128).
    o_ref[...] = (xf * gate).astype(o_ref.dtype)


# ----------------------------------------------------------------------------
# Wrapper helpers.
# ----------------------------------------------------------------------------
def _make_weight_map(w2x2, C, H, W):
    """Fold adaptive_avg_pool2d((2,2)) + depthwise 2x2 conv + global avg pool
    into a per-pixel weight map (C, H*W), computed once per call in XLA."""
    h2, w2 = H // 2, W // 2
    top = (jnp.arange(H) < h2).astype(jnp.float32)[:, None]        # (H, 1)
    left = (jnp.arange(W) < w2).astype(jnp.float32)[None, :]       # (1, W)
    tl = (top * left).reshape(1, H * W)
    tr = (top * (1.0 - left)).reshape(1, H * W)
    bl = ((1.0 - top) * left).reshape(1, H * W)
    br = ((1.0 - top) * (1.0 - left)).reshape(1, H * W)
    wq = w2x2.reshape(C, 4).astype(jnp.float32)                    # [TL, TR, BL, BR]
    wmap = (wq[:, 0:1] * tl + wq[:, 1:2] * tr +
            wq[:, 2:3] * bl + wq[:, 3:4] * br) / float(h2 * w2)
    return wmap + 1.0 / float(H * W)               # + global-pool contribution


def ipam_forward(x, w2x2, w1d, *, block_batch=None, vmem_budget_bytes=20 << 20):
    """IPAM forward.  x: (B, C, H, W); w2x2: (C, 1, 2, 2); w1d: (1, 1, 3)."""
    B, C, H, W = x.shape
    assert H % 2 == 0 and W % 2 == 0, "IPAM kernel requires even H and W"
    HW = H * W
    assert HW % 128 == 0, "H*W must be a multiple of 128 for lane-dense blocks"

    x_flat = x.reshape(B, C, HW)                   # free contiguous collapse
    wmap = _make_weight_map(w2x2, C, H, W)         # (C, HW) f32, batch-invariant
    w1d_v = w1d.reshape(3).astype(jnp.float32)     # CAM taps -> SMEM

    bpe = x.dtype.itemsize
    batch_bytes = C * HW * bpe                     # one batch row of x / out
    wmap_bytes = C * HW * 4

    # Per-step VMEM: double-buffered x block + double-buffered out block,
    # plus the resident weight map (conservatively counted twice).
    fixed_bytes = 2 * wmap_bytes
    per_batch_step_bytes = 4 * batch_bytes
    if fixed_bytes + per_batch_step_bytes > vmem_budget_bytes:
        # TODO(synk): HW-tiled two-pass fallback for very large spatial extents.
        raise NotImplementedError("single-batch block exceeds the VMEM budget")

    if block_batch is None:
        bt = pl.cdiv(1 << 20, batch_bytes)         # target >= ~1 MiB input blocks
        bt = min(bt, (vmem_budget_bytes - fixed_bytes) // per_batch_step_bytes)
        if B >= 2:
            bt = min(bt, pl.cdiv(B, 2))            # keep >= 2 grid steps (v7x megacore)
        bt = max(1, min(bt, B))
    else:
        bt = max(1, min(block_batch, B))
    grid = (pl.cdiv(B, bt),)

    vmem_needed = fixed_bytes + bt * per_batch_step_bytes
    vmem_limit = int(min(max(vmem_needed + (4 << 20), 16 << 20), 48 << 20))

    flops = 4 * B * C * HW
    bytes_accessed = 2 * B * C * HW * bpe + wmap_bytes + 16

    out = pl.pallas_call(
        _ipam_kernel,
        out_shape=jax.ShapeDtypeStruct((B, C, HW), x.dtype),
        grid=grid,
        in_specs=[
            pl.BlockSpec((bt, C, HW), lambda g: (g, 0, 0)),      # x (batched block)
            pl.BlockSpec((C, HW), lambda g: (0, 0)),             # weight map (resident)
            pl.BlockSpec(memory_space=pltpu.MemorySpace.SMEM),   # CAM taps
        ],
        out_specs=pl.BlockSpec((bt, C, HW), lambda g: (g, 0, 0)),
        compiler_params=pltpu.CompilerParams(
            dimension_semantics=("parallel",),
            vmem_limit_bytes=vmem_limit),
        cost_estimate=pl.CostEstimate(
            flops=flops, transcendentals=B * C, bytes_accessed=bytes_accessed),
    )(x_flat, wmap, w1d_v)
    return out.reshape(B, C, H, W)


# ----------------------------------------------------------------------------
# Pure-JAX reference mirroring the PyTorch IPAM forward.
# ----------------------------------------------------------------------------
def ipam_reference(x, w2x2, w1d):
    B, C, H, W = x.shape
    p = x.reshape(B, C, 2, H // 2, 2, W // 2).mean(axis=(3, 5))   # (B, C, 2, 2)
    o1 = jnp.einsum("bcij,cij->bc", p, w2x2[:, 0])                # depthwise 2x2
    o2 = x.mean(axis=(2, 3))                                      # global pool
    s = o1 + o2                                                   # (B, C)
    k = w1d[0, 0]                                                 # (3,)
    pad = jnp.pad(s, ((0, 0), (1, 1)))
    cam = k[0] * pad[:, :-2] + k[1] * pad[:, 1:-1] + k[2] * pad[:, 2:]
    gate = s * jax.nn.sigmoid(cam)                                # CAM output
    return x * gate[:, :, None, None]


if __name__ == "__main__":
    B, C, H, W = 4, 8, 16, 16                      # ch_in = 8, even spatial
    key = jax.random.PRNGKey(0)
    k1, k2, k3 = jax.random.split(key, 3)
    x = jax.random.normal(k1, (B, C, H, W), jnp.float32)
    w2x2 = 0.3 * jax.random.normal(k2, (C, 1, 2, 2), jnp.float32)   # depthwise 2x2
    w1d = 0.5 * jax.random.normal(k3, (1, 1, 3), jnp.float32)       # CAM conv1d

    out = jax.block_until_ready(ipam_forward(x, w2x2, w1d))
    ref = jax.block_until_ready(ipam_reference(x, w2x2, w1d))
    np.testing.assert_allclose(np.asarray(out), np.asarray(ref),
                               rtol=1e-4, atol=1e-4)
    print("KERNEL_OK")
</pallas_src>

<mosaic_0001>
module attributes {stable_mosaic.version = 11 : i64} {
  func.func @_ipam_kernel(%arg0: i32, %arg1: memref<2x8x256xf32, #tpu.memory_space<vmem>>, %arg2: memref<8x256xf32, #tpu.memory_space<vmem>>, %arg3: memref<3xf32, #tpu.memory_space<smem>>, %arg4: memref<2x8x256xf32, #tpu.memory_space<vmem>>) attributes {dimension_semantics = [#tpu.dimension_semantics<parallel>], iteration_bounds = array<i64: 2>, scalar_prefetch = 0 : i64, scratch_operands = 0 : i64, tpu.core_type = #tpu.core_type<tc>, window_params = [{transform_indices = @transform_0, window_bounds = array<i64: 2, 8, 256>}, {pipeline_mode = #tpu.pipeline_mode<synchronous>, transform_indices = @transform_1, window_bounds = array<i64: 8, 256>}, {transform_indices = @transform_2, window_bounds = array<i64: 3>}, {transform_indices = @transform_3, window_bounds = array<i64: 2, 8, 256>}]} {
    %c0 = arith.constant 0 : index
    %c0_0 = arith.constant 0 : index
    %c0_1 = arith.constant 0 : index
    %0 = vector.load %arg1[%c0, %c0_0, %c0_1] : memref<2x8x256xf32, #tpu.memory_space<vmem>>, vector<2x8x256xf32>
    %c0_2 = arith.constant 0 : index
    %c0_3 = arith.constant 0 : index
    %1 = vector.load %arg2[%c0_2, %c0_3] : memref<8x256xf32, #tpu.memory_space<vmem>>, vector<8x256xf32>
    %2 = vector.shape_cast %1 : vector<8x256xf32> to vector<1x8x256xf32>
    %3 = vector.broadcast %2 : vector<1x8x256xf32> to vector<2x8x256xf32>
    %4 = arith.mulf %0, %3 : vector<2x8x256xf32>
    %cst = arith.constant dense<0.000000e+00> : vector<2x8xf32>
    %5 = vector.multi_reduction <add>, %4, %cst [2] : vector<2x8x256xf32> to vector<2x8xf32>
    %6 = vector.shape_cast %5 : vector<2x8xf32> to vector<2x8x1xf32>
    %c0_4 = arith.constant 0 : index
    %7 = memref.load %arg3[%c0_4] : memref<3xf32, #tpu.memory_space<smem>>
    %c1 = arith.constant 1 : index
    %8 = memref.load %arg3[%c1] : memref<3xf32, #tpu.memory_space<smem>>
    %c2 = arith.constant 2 : index
    %9 = memref.load %arg3[%c2] : memref<3xf32, #tpu.memory_space<smem>>
    %cst_5 = arith.constant 0.000000e+00 : f32
    %10 = vector.broadcast %cst_5 : f32 to vector<2x1x1xf32>
    %11 = vector.extract_strided_slice %6 {offsets = [0, 0, 0], sizes = [2, 7, 1], strides = [1, 1, 1]} : vector<2x8x1xf32> to vector<2x7x1xf32>
    %12 = tpu.concatenate %10, %11 in 1 : vector<2x1x1xf32>, vector<2x7x1xf32> -> vector<2x8x1xf32>
    %13 = vector.extract_strided_slice %6 {offsets = [0, 1, 0], sizes = [2, 7, 1], strides = [1, 1, 1]} : vector<2x8x1xf32> to vector<2x7x1xf32>
    %14 = tpu.concatenate %13, %10 in 1 : vector<2x7x1xf32>, vector<2x1x1xf32> -> vector<2x8x1xf32>
    %15 = vector.broadcast %7 : f32 to vector<2x8x1xf32>
    %16 = arith.mulf %15, %12 : vector<2x8x1xf32>
    %17 = vector.broadcast %8 : f32 to vector<2x8x1xf32>
    %18 = arith.mulf %17, %6 : vector<2x8x1xf32>
    %19 = arith.addf %16, %18 : vector<2x8x1xf32>
    %20 = vector.broadcast %9 : f32 to vector<2x8x1xf32>
    %21 = arith.mulf %20, %14 : vector<2x8x1xf32>
    %22 = arith.addf %19, %21 : vector<2x8x1xf32>
    %23 = arith.negf %22 : vector<2x8x1xf32>
    %24 = math.exp %23 : vector<2x8x1xf32>
    %cst_6 = arith.constant 1.000000e+00 : f32
    %25 = vector.broadcast %cst_6 : f32 to vector<2x8x1xf32>
    %26 = arith.addf %25, %24 : vector<2x8x1xf32>
    %27 = arith.divf %25, %26 : vector<2x8x1xf32>
    %28 = arith.mulf %6, %27 : vector<2x8x1xf32>
    %29 = vector.broadcast %28 : vector<2x8x1xf32> to vector<2x8x256xf32>
    %30 = arith.mulf %0, %29 : vector<2x8x256xf32>
    %c0_7 = arith.constant 0 : index
    %c0_8 = arith.constant 0 : index
    %c0_9 = arith.constant 0 : index
    %31 = vector.load %arg4[%c0_7, %c0_8, %c0_9] : memref<2x8x256xf32, #tpu.memory_space<vmem>>, vector<2x8x256xf32>
    tpu.vector_store %arg4[%c0_7, %c0_8, %c0_9], %30 {strides = array<i32>} : memref<2x8x256xf32, #tpu.memory_space<vmem>>, vector<2x8x256xf32>,
    return
  }
  func.func @transform_0(%arg0: i32) -> (i32, i32, i32) {
    %c0_i32 = arith.constant 0 : i32
    %c0_i32_0 = arith.constant 0 : i32
    %c0_i32_1 = arith.constant 0 : i32
    return %arg0, %c0_i32, %c0_i32_0 : i32, i32, i32
  }
  func.func @transform_1(%arg0: i32) -> (i32, i32) {
    %c0_i32 = arith.constant 0 : i32
    %c0_i32_0 = arith.constant 0 : i32
    %c0_i32_1 = arith.constant 0 : i32
    return %c0_i32, %c0_i32_0 : i32, i32
  }
  func.func @transform_2(%arg0: i32) -> i32 {
    %c0_i32 = arith.constant 0 : i32
    %c0_i32_0 = arith.constant 0 : i32
    return %c0_i32 : i32
  }
  func.func @transform_3(%arg0: i32) -> (i32, i32, i32) {
    %c0_i32 = arith.constant 0 : i32
    %c0_i32_0 = arith.constant 0 : i32
    %c0_i32_1 = arith.constant 0 : i32
    return %arg0, %c0_i32, %c0_i32_0 : i32, i32, i32
  }
}

</mosaic_0001>

<bundles_post_ra>
// kernel: tpu_custom_call.1
= control target key start
LH: loop header
LB: loop body
LE: loop exit
PB: predicated region body
PF: predicated region fallthrough
CT: control target
= control target key end

     0   :  { %8 = vsyncpa [#allocation3], 0  ;;  %s902_s0 = inlined_call_operand.hbm [shape: f32[4,8,256], index: 0, kind: input, shape index: {}]   ;;  %s903_s1 = inlined_call_operand.hbm [shape: f32[8,256], index: 1, kind: input, shape index: {}]   ;;  %s904_s2 = inlined_call_operand.vmem [shape: f32[3], index: 2, kind: input, shape index: {}]   ;;  %s905_s3 = inlined_call_operand.hbm [shape: f32[4,8,256], index: 3, kind: output, shape index: {}]  }
   0x1   :  { %10 = vsyncpa [#allocation3 + $0x1], 0 }
   0x2   :  { %11 = vsyncpa [#allocation7], 0 }
   0x3   :  { %12 = vsyncpa [#allocation5], 0 }
   0x4   :  { %13 = vsyncpa [#allocation4], 0 }
   0x5   :  { %15 = vsyncpa [#allocation4 + $0x1], 0  ;;  %s729_s12 = smov 0   ;;  %s731_s13 = smov 0  }
   0x6   :  { %s733_s14 = smov 0   ;;  %s735_s15 = smov 0  }
   0x7 LB: > { %s750_s16 = sadd.s32 4294967295, %s700_s15   ;;  %s441_s17 = sadd.s32 4294967294, %s700_s15   ;;  %s700_s15 = sphi %s735_s15, %s916_s15   ;;  %s696_s14 = sphi %s733_s14, %s915_s14   ;;  %s692_s13 = sphi %s731_s13, %s914_s13   ;;  %s688_s12 = sphi %s729_s12, %s913_s12  }
   0x8   : > { %s754_s18 = sadd.s32 1, %s700_s15   ;;  %s28_s19 = sadd.s32 1, %s696_s14 }
   0x9   : > { %s25_s20 = ssub.s32 %s700_s15, %s754_s18  ;;  %p35_p0 = scmp.ne.s32.totalorder %s696_s14, %s692_s13 }
   0xa   : > { %p26_p1 = scmp.eq.s32.totalorder %s25_s20, 0  ;;  %p36_p2 = scmp.eq.s32.totalorder %s700_s15, 0 }
   0xb   : > { %p41_p3 = scmp.ne.s32.totalorder %s692_s13, %s688_s12  ;;  %p42_p4 = scmp.eq.s32.totalorder %s750_s16, 0 }
   0xc   : > { %s766_s21 = scalar_select %p26_p1, %s696_s14, %s28_s19  }
   0xd   : > { %p768_p5 = por %p36_p2, %p35_p0  ;;  %p774_p6 = por %p42_p4, %p41_p3 }
   0xe   : > { %p107_p7 = scmp.eq.s32.totalorder %s750_s16, 1  ;;  %p113_p8 = scmp.eq.s32.totalorder %s441_s17, 1 }
   0xf   : > { %p442_p9 = scmp.ge.s32.totalorder %s700_s15, 1  ;;  %p120_p10 = scmp.lt.s32.totalorder %s700_s15, 3 }
  0x10   : > { %p781_p11 = por %p107_p7, %p35_p0  ;;  %p785_p12 = por %p113_p8, %p41_p3 }
  0x11   : > { %p789_p13 = pnand %p442_p9, %p120_p10  ;;  %s132_s29 = sshll.u32 %s903_s1, 4  ;;  %s133_s29 = int_to_ptr.hbm [resolvable:$true] %s132_s29 }
  0x12   : > { %s702_s30 = smov [#allocation6]   ;;  %p498_p3 = scmp.lt.s32.totalorder %s700_s15, 2 }
  0x13   : > { %p481_p1 = pneg %p789_p13  ;;  %s134_s4 = sshll.u32 %s702_s30, 4  ;;  %s135_s4 = int_to_ptr.vmem [resolvable:$true] %s134_s4 }
  0x14   : > { %s144_s7 = sshll.u32 %s904_s2, 4  ;;  %p807_p7 = pnand %p498_p3, %p768_p5  ;;  %s145_s7 = int_to_ptr.vmem [resolvable:$true] %s144_s7 }
  0x15   : > { %p482_p2 = pnand %p481_p1, %p42_p4  ;;  %s703_s9 = smov [#allocation8]  }
  0x16   : > { %s155_s10 = sand.u32 1, %s696_s14   ;;  %s466_s17 = sshll.u32 %s700_s15, 5 }
  0x17   : > { %484 = dma.hbm_to_vmem [thread:$0]  (!%p482_p2), %s133_s29, 256, %s135_s4, [#allocation7]  }
  0x18   : > { %487 = dma.vmem_to_smem (!%p482_p2), %s145_s7, 16, %s703_s9, [#allocation5]  }
  0x19   : > { %s446_s11 = sshll.u32 %s155_s10, 5  ;;  %s165_s27 = scalar_lea.hbm %s902_s0, %s466_s17 }
  0x1a   : > { %s159_s28 = scalar_lea.vmem [#allocation2], %s446_s11  ;;  %s166_s5 = sshll.u32 %s165_s27, 4  ;;  %s167_s5 = int_to_ptr.hbm [resolvable:$true] %s166_s5 }
  0x1b   : > { %s168_s30 = sshll.u32 %s159_s28, 4  ;;  %s156_s22 = scalar_lea.sflag [#allocation3], %s155_s10  ;;  %s169_s30 = int_to_ptr.vmem [resolvable:$true] %s168_s30 }
  0x1c   : > { %s596_s29 = sshra.s32 %s167_s5, 4  ;;  %p600_p8 = pneg %p807_p7  ;;  %s597_s29 = int_to_ptr.hbm [resolvable:$true] %s596_s29 }
  0x1d   : > { %s598_s4 = scalar_lea.hbm %s597_s29, 32  ;;  %s603_s9 = scalar_lea.hbm %s902_s0, 64 }
  0x1e   : > { %p599_p5 = scmp.ne.s32.totalorder %s597_s29, %s598_s4  ;;  %p604_p1 = scmp.lt.s32.totalorder %s597_s29, %s902_s0 }
  0x1f   : > { %p605_p2 = scmp.lt.s32.totalorder %s603_s9, %s598_s4 }
  0x20   : > { %p601_p9 = pnand %p600_p8, %p599_p5 }
  0x21   : > { %p606_p3 = por %p605_p2, %p604_p1 }
  0x22   : > { %p602_p10 = pneg %p601_p9 }
  0x24   : > { %p607_p0 = pnand %p606_p3, %p602_p10 }
  0x26   : > { %610 = shalt.err (!%p607_p0)
}
  0x27   : > { %s704_s10 = smov 256   ;;  %s705_s11 = smov 16  }
  0x28   : > { %491 = dma.hbm_to_vmem [thread:$0]  (!%p807_p7), %s167_s5, 512, %s169_s30, %s156_s22, %s704_s10, %s704_s10, %s705_s11  }
  0x29   : > { %180 = sbr.rel (%p789_p13) target bundleno = 344 (0x158), region = 32  ;;  %s829_s20 = sand.u32 (!%p789_p13), 1, %s692_s13  }
  0x2a   : > { %s451_s27 = sshll.u32 (!%p789_p13), %s829_s20, 5  ;;  %s183_s28 = scalar_lea.sflag (!%p789_p13), [#allocation3], %s829_s20 }
  0x2b   : > { %s186_s29 = scalar_lea.vmem (!%p789_p13), [#allocation2], %s451_s27 }
  0x2e   : > { %671 = dma.done.wait (%p774_p6), %s183_s28, 512  }
  0x2f   : > { %673 = vsyncadd (%p774_p6), %s183_s28, 4294966784 }
  0x30   : > { %675 = dma.done.wait (%p42_p4), [#allocation7], 256  }
  0x31   : > { %677 = vsyncadd (%p42_p4), [#allocation7], 4294967040 }
  0x32   : > { %679 = dma.done.wait (%p42_p4), [#allocation5], 16  }
  0x33   : > { %681 = vsyncadd (%p42_p4), [#allocation5], 4294967280 }
  0x34   : > { %202 = sfence }
  0x35   : > { %v847_v0 = vld [vmem:[%s186_s29] sm:$0xff]  ;;  %v849_v1 = vld [vmem:[%s186_s29 + $0x8] sm:$0xff]  ;;  %v853_v6 = vld [vmem:[%s186_s29 + $0x10] sm:$0xff]  ;;  %s239_s23 = sld [smem:[#allocation8]]  ;;  %vm248_vm0 = vcmask 1040384   ;;  %vm255_vm1 = vcmask 1046528  }
  0x36   : > { %v227_v2 = vld [vmem:[#allocation6] sm:$0xff]  ;;  %v228_v3 = vld [vmem:[#allocation6 + $0x8] sm:$0xff]  ;;  %v855_v7 = vld [vmem:[%s186_s29 + $0x18] sm:$0xff]  ;;  %s455_s26 = sld [smem:[#allocation8 + $0x1]]  ;;  %v706_v24 = vmov 0   ;;  %s468_s30 = sshll.u32 %s750_s16, 5 }
  0x37   : > { %v229_v4 = vmul.f32 %v227_v2, %v847_v0  ;;  %v230_v5 = vmul.f32 %v228_v3, %v849_v1  ;;  %v231_v9 = vmul.f32 %v227_v2, %v853_v6  ;;  %v232_v10 = vmul.f32 %v228_v3, %v855_v7  ;;  %s456_s8 = sld [smem:[#allocation8 + $0x2]]  ;;  %541 = vset.pattern.permute.xlu1 %v706_v24  ;;  %s220_s5 = scalar_lea.vmem [#allocation9], %s451_s27 }
  0x38   : > { %542 = vset.pattern.permute.xlu0 %v706_v24  ;;  %s342_s6 = scalar_lea.hbm %s905_s3, %s468_s30  ;;  %s343_s7 = sshll.u32 %s220_s5, 4  ;;  %s344_s7 = int_to_ptr.vmem [resolvable:$true] %s343_s7 }
  0x39   : > { %v233_v8 = vadd.f32 %v230_v5, %v229_v4  ;;  %v236_v11 = vadd.f32 %v232_v10, %v231_v9  ;;  %s345_s9 = sshll.u32 %s342_s6, 4  ;;  %s330_s16 = scalar_lea.sflag [#allocation4], %s829_s20  ;;  %s346_s9 = int_to_ptr.hbm [resolvable:$true] %s345_s9 }
  0x3a   : > { %s640_s19 = sshra.s32 %s346_s9, 4  ;;  %s646_s27 = scalar_lea.hbm %s905_s3, 64  ;;  %s641_s19 = int_to_ptr.hbm [resolvable:$true] %s640_s19 }
  0x3b   : > { %234 = vadd.xlane.f32.xlu0 %v233_v8  ;;  %v258_v15 = vstv %s239_s23  ;;  %s642_s17 = scalar_lea.hbm %s641_s19, 32  ;;  %p647_p0 = scmp.lt.s32.totalorder %s641_s19, %s905_s3 }
  0x3c   : > { %v261_v16 = vstv %s455_s26  ;;  %p643_p4 = scmp.ne.s32.totalorder %s641_s19, %s642_s17  ;;  %p648_p7 = scmp.lt.s32.totalorder %s646_s27, %s642_s17 }
  0x3d   : > { %v266_v19 = vstv %s456_s8 }
  0x3e   : > { %p644_p6 = pnand %p643_p4, %p781_p11  ;;  %p649_p5 = por %p648_p7, %p647_p0 }
  0x40   : > { %p645_p13 = pneg %p644_p6 }
  0x42   : > { %p650_p8 = pnand %p649_p5, %p645_p13 }
  0x43   : > { %237 = vadd.xlane.f32.xlu0 %v236_v11 }
  0xae   : > { %v235_v12 = vpop.xlane.xlu0 %234 }
  0xaf   : > { %v244_v13 = vrot.slane %v235_v12, 7  ;;  %v251_v14 = vrot.slane %v235_v12, 1  ;;  %v262_v21 = vmul.f32 %v261_v16, %v235_v12 }
  0xb1   : > { %v249_v17 = vsel %vm248_vm0, 0.0, %v244_v13  ;;  %v256_v18 = vsel %vm255_vm1, %v251_v14, 0.0 }
  0xb2   : > { %v259_v20 = vmul.f32 %v258_v15, %v249_v17  ;;  %v267_v23 = vmul.f32 %v266_v19, %v256_v18 }
  0xb4   : > { %v264_v22 = vadd.f32 %v262_v21, %v259_v20 }
  0xb6   : > { %v269_v25 = vadd.f32 %v267_v23, %v264_v22  ;;  %v238_v26 = vpop.xlane.xlu0 %237 }
  0xb7   : > { %v245_v27 = vrot.slane %v238_v26, 7  ;;  %v252_v28 = vrot.slane %v238_v26, 1  ;;  %v263_v33 = vmul.f32 %v261_v16, %v238_v26 }
  0xb8   : > { %v457_v29 = vmul.f32 -1.442695, %v269_v25 }
  0xb9   : > { %v250_v30 = vsel %vm248_vm0, 0.0, %v245_v27  ;;  %v257_v31 = vsel %vm255_vm1, %v252_v28, 0.0 }
  0xba   : > { %543 = vpow2.f32 %v457_v29  ;;  %v260_v32 = vmul.f32 %v258_v15, %v250_v30  ;;  %v268_v35 = vmul.f32 %v266_v19, %v257_v31 }
  0xbc   : > { %v265_v34 = vadd.f32 %v263_v33, %v260_v32 }
  0xbe   : > { %v270_v36 = vadd.f32 %v268_v35, %v265_v34 }
  0xc0   : > { %v544_v37 = vpop.eup %543  ;;  %v458_v38 = vmul.f32 -1.442695, %v270_v36 }
  0xc1   : > { %v277_v39 = vadd.f32 1.0, %v544_v37 }
  0xc2   : > { %545 = vpow2.f32 %v458_v38 }
  0xc3   : > { %547 = vrcp.f32 %v277_v39  ;;  %v290_v45 = vand.u32 2147483648, %v277_v39  ;;  %v288_v47 = vand.u32 2147483647, %v277_v39  ;;  %vm284_vm3 = vweird.f32 %v277_v39 }
  0xc5   : > { %v291_v50 = vor.u32 1.1754944e-38, %v290_v45  ;;  %vm289_vm5 = vcmp.eq.f32.partialorder %v288_v47, 8.507059e+37 }
  0xc8   : > { %v546_v40 = vpop.eup %545 }
  0xc9   : > { %v548_v41 = vpop.eup %547  ;;  %v278_v42 = vadd.f32 1.0, %v546_v40 }
  0xca   : > { %v280_v43 = vmul.f32 %v548_v41, %v277_v39  ;;  %vm285_vm2 = vweird.f32 %v548_v41 }
  0xcb   : > { %549 = vrcp.f32 %v278_v42  ;;  %vm286_vm4 = vmor %vm284_vm3, %vm285_vm2  ;;  %v305_v56 = vand.u32 2147483648, %v278_v42  ;;  %v303_v58 = vand.u32 2147483647, %v278_v42  ;;  %vm299_vm7 = vweird.f32 %v278_v42 }
  0xcc   : > { %v281_v44 = vsub.f32 1.0, %v280_v43 }
  0xcd   : > { %v306_v60 = vor.u32 1.1754944e-38, %v305_v56  ;;  %vm304_vm9 = vcmp.eq.f32.partialorder %v303_v58, 8.507059e+37 }
  0xce   : > { %v282_v46 = vmul.f32 %v548_v41, %v281_v44 }
  0xd0   : > { %v283_v48 = vadd.f32 %v548_v41, %v282_v46 }
  0xd1   : > { %v550_v49 = vpop.eup %549 }
  0xd2   : > { %v295_v51 = vmul.f32 %v550_v49, %v278_v42  ;;  %v287_v52 = vsel %vm286_vm4, %v548_v41, %v283_v48  ;;  %vm300_vm6 = vweird.f32 %v550_v49 }
  0xd3   : > { %v292_v53 = vsel %vm289_vm5, %v291_v50, %v287_v52  ;;  %vm301_vm8 = vmor %vm299_vm7, %vm300_vm6 }
  0xd4   : > { %v296_v54 = vsub.f32 1.0, %v295_v51  ;;  %v309_v55 = vmul.f32 %v292_v53, %v235_v12 }
  0xd6   : > { %v297_v57 = vmul.f32 %v550_v49, %v296_v54  ;;  %313 = vperm.xlu1 %541, %v309_v55  }
  0xd8   : > { %v298_v59 = vadd.f32 %v550_v49, %v297_v57 }
  0xda   : > { %v302_v61 = vsel %vm301_vm8, %v550_v49, %v298_v59 }
  0xdb   : > { %v307_v62 = vsel %vm304_vm9, %v306_v60, %v302_v61 }
  0xdc   : > { %v310_v63 = vmul.f32 %v307_v62, %v238_v26 }
  0xde   : > { %318 = vperm.xlu1 %541, %v310_v63  }
 0x148   : > { %v314_v2 = vpop.permute.xlu1 %313 }
 0x149   : > { %v321_v3 = vmul.f32 %v314_v2, %v847_v0  ;;  %v322_v4 = vmul.f32 %v314_v2, %v849_v1 }
 0x14b   : > { %325 = vst [vmem:[%s220_s5] sm:$0xff] %v321_v3 }
 0x14c   : > { %326 = vst [vmem:[%s220_s5 + $0x8] sm:$0xff] %v322_v4 }
 0x150   : > { %v319_v5 = vpop.permute.xlu1 %318 }
 0x151   : > { %v323_v8 = vmul.f32 %v319_v5, %v853_v6  ;;  %v324_v9 = vmul.f32 %v319_v5, %v855_v7 }
 0x153   : > { %327 = vst [vmem:[%s220_s5 + $0x10] sm:$0xff] %v323_v8 }
 0x154   : > { %328 = vst [vmem:[%s220_s5 + $0x18] sm:$0xff] %v324_v9 }
 0x155   : > { %653 = shalt.err (!%p650_p8)
}
 0x156   : > { %s707_s20 = smov 256   ;;  %s708_s23 = smov 16  }
 0x157   : > { %479 = dma.vmem_to_hbm [thread:$0]  (%p781_p11), %s344_s7, 512, %s346_s9, %s330_s16, %s707_s20, %s707_s20, %s708_s23  }
 0x158 PF: > { %s360_s26 = sand.u32 1, %s688_s12   ;;  %p912_p9 = scmp.ge.s32.totalorder %s700_s15, 2 }
 0x159   : > { %s361_s8 = scalar_lea.sflag [#allocation4], %s360_s26 }
 0x15a   : > { %p493_p10 = pnand %p912_p9, %p785_p12 }
 0x15c   : > { %p494_p1 = pneg %p493_p10 }
 0x15e   : > { %683 = dma.done.wait (%p494_p1), %s361_s8, 512  }
 0x15f   : > { %685 = vsyncadd (%p494_p1), %s361_s8, 4294966784  ;;  %p18_p2 = scmp.ge.s32.totalorder %s754_s18, 4   ;;  %s913_s12 = smov %s692_s13 }
 0x160   : > { %s914_s13 = smov %s696_s14  ;;  %s915_s14 = smov %s766_s21 }
 0x161   : > { %s916_s15 = smov %s754_s18  ;;  %20 = sbr.rel (!%p18_p2) target bundleno = 7 (0x7), region = 86 }
 0x166   :  { %367 = vsyncpa [#allocation3], 1 }
 0x167   :  { %369 = vsyncpa [#allocation3 + $0x1], 1 }
 0x168   :  { %370 = vsyncpa [#allocation7], 1 }
 0x169   :  { %371 = vsyncpa [#allocation4], 1 }
 0x16a   :  { %373 = vsyncpa [#allocation4 + $0x1], 1 }
 0x16b   :  { %374 = vsyncpa [#allocation5], 1 }
 0x16c   :  { %376 = vsyncpa [#allocation5 + $0x1], 1 }

</bundles_post_ra>
